<compile_context>
chip_gen: v6e
topology: v6e:2x2x1
jax: 0.10.0
libtpu: 0.0.40
codegen_flags: <defaults>
</compile_context>

<pallas_src>
import functools

import jax
import jax.numpy as jnp
from jax.experimental import pallas as pl
from jax.experimental.pallas import tpu as pltpu


def _round_up(x, m):
    return ((x + m - 1) // m) * m


def _cdiv(a, b):
    return (a + b - 1) // b


def _dqn_kernel(x_ref, w1_ref, b1_ref, w2_ref, b2_ref, out_ref):
    # Matmul 1 on the MXU; bias add + ReLU in f32 on the VPU.  Padded hidden
    # columns are exactly zero (zero weight cols, zero bias), so the math is exact.
    h = jnp.dot(x_ref[...], w1_ref[...], preferred_element_type=jnp.float32)
    h = jnp.maximum(h + b1_ref[...], 0.0)
    # Matmul 2 keeps the lane-padded N=128 weight tile in VMEM for decent MXU N ...
    acc = jnp.dot(h.astype(w2_ref.dtype), w2_ref[...], preferred_element_type=jnp.float32)
    # ... but only the real n_actions columns are biased and written back to HBM.
    n_real = out_ref.shape[-1]
    out_ref[...] = (acc[:, :n_real] + b2_ref[...]).astype(out_ref.dtype)


def prepare_params(w1, b1, w2, b2, *, operand_dtype=jnp.float32):
    """Pad / lay out parameters ONCE (hoisted out of the per-step forward).

    w1: (env_inputs, hidden)  -- PyTorch hidden.weight.T
    w2: (hidden, n_actions)   -- PyTorch output.weight.T
    operand_dtype: jnp.float32 (exact-ish) or jnp.bfloat16 (faster on v6e/v7x).
    """
    env_inputs, hidden = w1.shape
    n_actions = w2.shape[1]
    hidden_pad = _round_up(hidden, 128)      # 200 -> 256 (clean K for 2nd matmul)
    out_pad = _round_up(n_actions, 128)      # matmul-N only; never written to HBM

    w1_p = jnp.pad(w1, ((0, 0), (0, hidden_pad - hidden))).astype(operand_dtype)
    b1_p = jnp.pad(b1.reshape(1, -1), ((0, 0), (0, hidden_pad - hidden))).astype(jnp.float32)
    w2_p = jnp.pad(w2, ((0, hidden_pad - hidden), (0, out_pad - n_actions))).astype(operand_dtype)
    b2_p = b2.reshape(1, -1).astype(jnp.float32)   # stays narrow: (1, n_actions)
    return w1_p, b1_p, w2_p, b2_p


@functools.partial(jax.jit, static_argnames=("tile_m",))
def dqn_forward(x, w1_p, b1_p, w2_p, b2_p, *, tile_m=2048):
    """x: (B, env_inputs) f32.  Params come from prepare_params().

    Returns (B, n_actions) f32, same math as the PyTorch forward.
    """
    B, env_inputs = x.shape
    hidden_pad = w1_p.shape[1]
    out_pad = w2_p.shape[1]
    n_actions = b2_p.shape[1]

    # --- batch tiling: big tiles (amortize ~0.35us/step), multiples of 16 (bf16-safe),
    # >=2 tiles for medium batches so both v7x TensorCores get work, and tile count
    # picked so padding waste is <16 rows per tile. ---
    tile_m = max(16, _round_up(tile_m, 16))
    n_tiles = _cdiv(B, tile_m)
    if n_tiles == 1 and B >= 64:
        n_tiles = 2                      # engage both TCs on v7x for medium batches
    tm = _round_up(_cdiv(B, n_tiles), 16)
    b_pad = n_tiles * tm

    x_p = x.astype(w1_p.dtype)           # bf16 operands halve x HBM traffic on v6e/v7x
    if b_pad != B:
        x_p = jnp.pad(x_p, ((0, b_pad - B), (0, 0)))

    flops = 2 * b_pad * hidden_pad * (env_inputs + out_pad)
    bytes_accessed = (
        x_p.size * x_p.dtype.itemsize
        + b_pad * n_actions * 4
        + w1_p.size * w1_p.dtype.itemsize
        + w2_p.size * w2_p.dtype.itemsize
        + (b1_p.size + b2_p.size) * 4
    )

    out = pl.pallas_call(
        _dqn_kernel,
        out_shape=jax.ShapeDtypeStruct((b_pad, n_actions), jnp.float32),
        grid=(n_tiles,),
        in_specs=[
            pl.BlockSpec((tm, env_inputs), lambda i: (i, 0)),          # x: tiled over batch
            pl.BlockSpec((env_inputs, hidden_pad), lambda i: (0, 0)),  # w1: VMEM-resident
            pl.BlockSpec((1, hidden_pad), lambda i: (0, 0)),           # b1: resident
            pl.BlockSpec((hidden_pad, out_pad), lambda i: (0, 0)),     # w2: resident (padded N)
            pl.BlockSpec((1, n_actions), lambda i: (0, 0)),            # b2: resident (narrow)
        ],
        out_specs=pl.BlockSpec((tm, n_actions), lambda i: (i, 0)),     # narrow HBM writeback
        compiler_params=pltpu.CompilerParams(
            dimension_semantics=("parallel",),       # batch tiles independent -> megacore
            vmem_limit_bytes=32 * 1024 * 1024,       # well within v7x's 64 MiB/TC
        ),
        cost_estimate=pl.CostEstimate(
            flops=flops, transcendentals=0, bytes_accessed=bytes_accessed),
    )(x_p, w1_p, b1_p, w2_p, b2_p)

    return out if b_pad == B else out[:B]


def init_params(key, env_inputs, n_actions, hidden=200):
    # Deterministic init mirroring nn.Linear's uniform(-1/sqrt(fan_in), 1/sqrt(fan_in)).
    k1, k2, k3, k4 = jax.random.split(key, 4)
    bound1 = 1.0 / jnp.sqrt(env_inputs)
    bound2 = 1.0 / jnp.sqrt(hidden)
    w1 = jax.random.uniform(k1, (env_inputs, hidden), jnp.float32, -bound1, bound1)
    b1 = jax.random.uniform(k2, (hidden,), jnp.float32, -bound1, bound1)
    w2 = jax.random.uniform(k3, (hidden, n_actions), jnp.float32, -bound2, bound2)
    b2 = jax.random.uniform(k4, (n_actions,), jnp.float32, -bound2, bound2)
    return w1, b1, w2, b2


if __name__ == "__main__":
    key = jax.random.PRNGKey(0)
    env_inputs, n_actions, batch = 8, 4, 2
    kx, kp = jax.random.split(key)
    x = jax.random.normal(kx, (batch, env_inputs), jnp.float32)
    w1, b1, w2, b2 = init_params(kp, env_inputs, n_actions)

    def ref_fwd(xv):
        return jnp.maximum(xv @ w1 + b1, 0.0) @ w2 + b2

    # f32-operand path (default; matches the PyTorch forward to float tolerance).
    params_f32 = prepare_params(w1, b1, w2, b2)
    out = dqn_forward(x, *params_f32)
    jax.block_until_ready(out)
    assert out.shape == (batch, n_actions)
    assert jnp.allclose(out, ref_fwd(x), atol=1e-5, rtol=1e-5)

    # Replay-buffer-style batch: exercises batch tiling, >=2 grid steps and batch padding.
    xb = jax.random.normal(kx, (1000, env_inputs), jnp.float32)
    outb = dqn_forward(xb, *params_f32)
    jax.block_until_ready(outb)
    assert outb.shape == (1000, n_actions)
    assert jnp.allclose(outb, ref_fwd(xb), atol=1e-4, rtol=1e-4)

    # bf16-operand path (native MXU rate on v6e/v7x, halved x/W HBM traffic); f32 accumulate.
    params_bf16 = prepare_params(w1, b1, w2, b2, operand_dtype=jnp.bfloat16)
    outbf = dqn_forward(xb, *params_bf16)
    jax.block_until_ready(outbf)
    assert outbf.shape == (1000, n_actions)
    assert jnp.allclose(outbf, ref_fwd(xb), atol=5e-2, rtol=5e-2)

    print("KERNEL_OK")
</pallas_src>

<mosaic_0001>
module attributes {stable_mosaic.version = 11 : i64} {
  func.func @_dqn_kernel(%arg0: i32, %arg1: memref<16x8xf32, #tpu.memory_space<vmem>>, %arg2: memref<8x256xf32, #tpu.memory_space<vmem>>, %arg3: memref<1x256xf32, #tpu.memory_space<vmem>>, %arg4: memref<256x128xf32, #tpu.memory_space<vmem>>, %arg5: memref<1x4xf32, #tpu.memory_space<vmem>>, %arg6: memref<16x4xf32, #tpu.memory_space<vmem>>) attributes {dimension_semantics = [#tpu.dimension_semantics<parallel>], iteration_bounds = array<i64: 1>, scalar_prefetch = 0 : i64, scratch_operands = 0 : i64, tpu.core_type = #tpu.core_type<tc>, window_params = [{transform_indices = @transform_0, window_bounds = array<i64: 16, 8>}, {pipeline_mode = #tpu.pipeline_mode<synchronous>, transform_indices = @transform_1, window_bounds = array<i64: 8, 256>}, {pipeline_mode = #tpu.pipeline_mode<synchronous>, transform_indices = @transform_2, window_bounds = array<i64: 1, 256>}, {pipeline_mode = #tpu.pipeline_mode<synchronous>, transform_indices = @transform_3, window_bounds = array<i64: 256, 128>}, {pipeline_mode = #tpu.pipeline_mode<synchronous>, transform_indices = @transform_4, window_bounds = array<i64: 1, 4>}, {transform_indices = @transform_5, window_bounds = array<i64: 16, 4>}]} {
    %c0 = arith.constant 0 : index
    %c0_0 = arith.constant 0 : index
    %0 = vector.load %arg1[%c0, %c0_0] : memref<16x8xf32, #tpu.memory_space<vmem>>, vector<16x8xf32>
    %c0_1 = arith.constant 0 : index
    %c0_2 = arith.constant 0 : index
    %1 = vector.load %arg2[%c0_1, %c0_2] : memref<8x256xf32, #tpu.memory_space<vmem>>, vector<8x256xf32>
    %cst = arith.constant dense<0.000000e+00> : vector<16x256xf32>
    %2 = tpu.matmul %0, %1, %cst {dimension_numbers = #tpu.dot_dimension_numbers<[1], [0], [0], [1], [0, 0, 1, 1], [], []>} : vector<16x8xf32>, vector<8x256xf32>, vector<16x256xf32> -> vector<16x256xf32>
    %c0_3 = arith.constant 0 : index
    %c0_4 = arith.constant 0 : index
    %3 = vector.load %arg3[%c0_3, %c0_4] : memref<1x256xf32, #tpu.memory_space<vmem>>, vector<1x256xf32>
    %4 = vector.broadcast %3 : vector<1x256xf32> to vector<16x256xf32>
    %5 = arith.addf %2, %4 : vector<16x256xf32>
    %cst_5 = arith.constant 0.000000e+00 : f32
    %6 = vector.broadcast %cst_5 : f32 to vector<16x256xf32>
    %7 = arith.maximumf %5, %6 : vector<16x256xf32>
    %c0_6 = arith.constant 0 : index
    %c0_7 = arith.constant 0 : index
    %8 = vector.load %arg4[%c0_6, %c0_7] : memref<256x128xf32, #tpu.memory_space<vmem>>, vector<256x128xf32>
    %cst_8 = arith.constant dense<0.000000e+00> : vector<16x128xf32>
    %9 = tpu.matmul %7, %8, %cst_8 {dimension_numbers = #tpu.dot_dimension_numbers<[1], [0], [0], [1], [0, 0, 1, 1], [], []>} : vector<16x256xf32>, vector<256x128xf32>, vector<16x128xf32> -> vector<16x128xf32>
    %10 = vector.extract_strided_slice %9 {offsets = [0, 0], sizes = [16, 4], strides = [1, 1]} : vector<16x128xf32> to vector<16x4xf32>
    %c0_9 = arith.constant 0 : index
    %c0_10 = arith.constant 0 : index
    %11 = vector.load %arg5[%c0_9, %c0_10] : memref<1x4xf32, #tpu.memory_space<vmem>>, vector<1x4xf32>
    %12 = vector.broadcast %11 : vector<1x4xf32> to vector<16x4xf32>
    %13 = arith.addf %10, %12 : vector<16x4xf32>
    %c0_11 = arith.constant 0 : index
    %c0_12 = arith.constant 0 : index
    %14 = vector.load %arg6[%c0_11, %c0_12] : memref<16x4xf32, #tpu.memory_space<vmem>>, vector<16x4xf32>
    tpu.vector_store %arg6[%c0_11, %c0_12], %13 {strides = array<i32>} : memref<16x4xf32, #tpu.memory_space<vmem>>, vector<16x4xf32>,
    return
  }
  func.func @transform_0(%arg0: i32) -> (i32, i32) {
    %c0_i32 = arith.constant 0 : i32
    %c0_i32_0 = arith.constant 0 : i32
    return %arg0, %c0_i32 : i32, i32
  }
  func.func @transform_1(%arg0: i32) -> (i32, i32) {
    %c0_i32 = arith.constant 0 : i32
    %c0_i32_0 = arith.constant 0 : i32
    %c0_i32_1 = arith.constant 0 : i32
    return %c0_i32, %c0_i32_0 : i32, i32
  }
  func.func @transform_2(%arg0: i32) -> (i32, i32) {
    %c0_i32 = arith.constant 0 : i32
    %c0_i32_0 = arith.constant 0 : i32
    %c0_i32_1 = arith.constant 0 : i32
    return %c0_i32, %c0_i32_0 : i32, i32
  }
  func.func @transform_3(%arg0: i32) -> (i32, i32) {
    %c0_i32 = arith.constant 0 : i32
    %c0_i32_0 = arith.constant 0 : i32
    %c0_i32_1 = arith.constant 0 : i32
    return %c0_i32, %c0_i32_0 : i32, i32
  }
  func.func @transform_4(%arg0: i32) -> (i32, i32) {
    %c0_i32 = arith.constant 0 : i32
    %c0_i32_0 = arith.constant 0 : i32
    %c0_i32_1 = arith.constant 0 : i32
    return %c0_i32, %c0_i32_0 : i32, i32
  }
  func.func @transform_5(%arg0: i32) -> (i32, i32) {
    %c0_i32 = arith.constant 0 : i32
    %c0_i32_0 = arith.constant 0 : i32
    return %arg0, %c0_i32 : i32, i32
  }
}

</mosaic_0001>

<bundles_post_ra>
// kernel: dqn_forward.1
= control target key start
LH: loop header
LB: loop body
LE: loop exit
PB: predicated region body
PF: predicated region fallthrough
CT: control target
= control target key end

     0   :  { %10 = vsyncpa [#allocation3], 0  ;;  %s361_s18 = smov [#allocation2]   ;;  %s424_s0 = inlined_call_operand.vmem [shape: f32[16,8], index: 0, kind: input, shape index: {}]   ;;  %s425_s1 = inlined_call_operand.vmem [shape: f32[8,256], index: 1, kind: input, shape index: {}]   ;;  %s426_s2 = inlined_call_operand.vmem [shape: f32[1,256], index: 2, kind: input, shape index: {}]   ;;  %s427_s3 = inlined_call_operand.hbm [shape: f32[256,128], index: 3, kind: input, shape index: {}]   ;;  %s428_s4 = inlined_call_operand.vmem [shape: f32[1,4], index: 4, kind: input, shape index: {}]   ;;  %s429_s5 = inlined_call_operand.vmem [shape: f32[16,4], index: 5, kind: output, shape index: {}]  }
   0x1   :  { %s22_s19 = sshll.u32 %s361_s18, 4  ;;  %s23_s19 = int_to_ptr.vmem [resolvable:$true] %s22_s19 }
   0x2   :  { %s347_s20 = scalar_lea.vmem %s23_s19, 4096  ;;  %p352_p1 = scmp.lt.s32.totalorder %s23_s19, %s23_s19 }
   0x3   :  { %p348_p0 = scmp.ne.s32.totalorder %s23_s19, %s347_s20  ;;  %p353_p2 = scmp.lt.s32.totalorder %s347_s20, %s347_s20 }
   0x5   :  { %p354_p3 = por %p353_p2, %p352_p1 }
   0x7   :  { %p355_p4 = pnand %p354_p3, %p348_p0 }
   0x9   :  { %358 = shalt.err (!%p355_p4)
}
   0xa   :  { %s362_s21 = smov 128   ;;  %s363_s22 = smov 8  }
   0xb   :  { %28 = dma.hbm_to_vmem [thread:$0]  %s427_s3, 4096, %s23_s19, [#allocation3], %s362_s21, %s362_s21, %s363_s22  }
   0xc   :  { %359 = dma.done.wait [#allocation3], 4096  }
   0xd   :  { %360 = vsyncadd [#allocation3], 4294963200  ;;  %v364_v0 = vmov 0.0   ;;  %v37_v1 = vld [vmem:[%s425_s1 + $0x8] sm:$0xff]  ;;  %v36_v2 = vld [vmem:[%s425_s1] sm:$0xff]  ;;  %vm50_vm0 = vcmask 64512   ;;  %v40_v37 = vlaneseq }
   0xe   :  { %121 = vmatprep.mubr.f32.mxu0 %v364_v0  ;;  %v34_v3 = vld [vmem:[%s424_s0] sm:$0xff]  ;;  %87 = vmatprep.subr.mxu0 %v37_v1  ;;  %v169_v4 = vld [vmem:[#allocation2 + $0xf8] sm:$0xff]  ;;  %v168_v6 = vld [vmem:[#allocation2 + $0xf0] sm:$0xff]  ;;  %vm254_vm1 = vcmask 31744  }
   0xf   :  { %v153_v5 = vld [vmem:[#allocation2 + $0x78] sm:$0xff]  ;;  %88 = vmatpush1.msra.mxu0 %v36_v2  ;;  %303 = vmatprep.subr.mxu1 %v169_v4  ;;  %v152_v7 = vld [vmem:[#allocation2 + $0x70] sm:$0xff]  ;;  %v35_v8 = vld [vmem:[%s424_s0 + $0x8] sm:$0xff]  ;;  %v41_v38 = vshrl.u32 %v40_v37, 7 }
  0x10   :  { %262 = vmatmul.mubr.msk.f32.vlgmr.msra.gmra.mxu0 %vm50_vm0, %v34_v3  ;;  %265 = vmatprep.subr.mxu0 %v169_v4  ;;  %v167_v9 = vld [vmem:[#allocation2 + $0xe8] sm:$0xff]  ;;  %v166_v11 = vld [vmem:[#allocation2 + $0xe0] sm:$0xff]  ;;  %v165_v13 = vld [vmem:[#allocation2 + $0xd8] sm:$0xff] }
  0x11   :  { %127 = vmatprep.mubr.f32.mxu0 %v364_v0  ;;  %266 = vmatpush3.msra.mxu0 %v153_v5  ;;  %v151_v10 = vld [vmem:[#allocation2 + $0x68] sm:$0xff]  ;;  %v150_v12 = vld [vmem:[#allocation2 + $0x60] sm:$0xff]  ;;  %v149_v14 = vld [vmem:[#allocation2 + $0x58] sm:$0xff]  ;;  %v42_v39 = vsub.s32 0, %v41_v38  ;;  %v46_v41 = vsub.s32 1, %v41_v38 }
  0x12   :  { %267 = vmatprep.subr.mxu0 %v168_v6  ;;  %319 = vmatpush3.msra.mxu1 %v153_v5  ;;  %v164_v15 = vld [vmem:[#allocation2 + $0xd0] sm:$0xff]  ;;  %v163_v17 = vld [vmem:[#allocation2 + $0xc8] sm:$0xff]  ;;  %v162_v19 = vld [vmem:[#allocation2 + $0xc0] sm:$0xff] }
  0x13   :  { %268 = vmatpush3.msra.mxu0 %v152_v7  ;;  %304 = vmatprep.subr.mxu1 %v168_v6  ;;  %v148_v16 = vld [vmem:[#allocation2 + $0x50] sm:$0xff]  ;;  %v147_v18 = vld [vmem:[#allocation2 + $0x48] sm:$0xff]  ;;  %v146_v20 = vld [vmem:[#allocation2 + $0x40] sm:$0xff] }
  0x14   :  { %263 = vmatmul.mubr.msk.f32.gmra.mxu0 %vm50_vm0, %v35_v8  ;;  %269 = vmatprep.subr.mxu0 %v167_v9  ;;  %v161_v21 = vld [vmem:[#allocation2 + $0xb8] sm:$0xff]  ;;  %v160_v23 = vld [vmem:[#allocation2 + $0xb0] sm:$0xff]  ;;  %v159_v25 = vld [vmem:[#allocation2 + $0xa8] sm:$0xff] }
  0x15   :  { %270 = vmatpush3.msra.mxu0 %v151_v10  ;;  %320 = vmatpush3.msra.mxu1 %v152_v7  ;;  %v145_v22 = vld [vmem:[#allocation2 + $0x38] sm:$0xff]  ;;  %v144_v24 = vld [vmem:[#allocation2 + $0x30] sm:$0xff]  ;;  %v143_v26 = vld [vmem:[#allocation2 + $0x28] sm:$0xff] }
  0x16   :  { %271 = vmatprep.subr.mxu0 %v166_v11  ;;  %305 = vmatprep.subr.mxu1 %v167_v9  ;;  %v158_v27 = vld [vmem:[#allocation2 + $0xa0] sm:$0xff]  ;;  %v157_v29 = vld [vmem:[#allocation2 + $0x98] sm:$0xff]  ;;  %v156_v31 = vld [vmem:[#allocation2 + $0x90] sm:$0xff] }
  0x17   :  { %272 = vmatpush3.msra.mxu0 %v150_v12  ;;  %321 = vmatpush3.msra.mxu1 %v151_v10  ;;  %v142_v28 = vld [vmem:[#allocation2 + $0x20] sm:$0xff]  ;;  %v141_v30 = vld [vmem:[#allocation2 + $0x18] sm:$0xff]  ;;  %v140_v32 = vld [vmem:[#allocation2 + $0x10] sm:$0xff] }
  0x18   :  { %273 = vmatprep.subr.mxu0 %v165_v13  ;;  %306 = vmatprep.subr.mxu1 %v166_v11  ;;  %v155_v33 = vld [vmem:[#allocation2 + $0x88] sm:$0xff]  ;;  %v154_v35 = vld [vmem:[#allocation2 + $0x80] sm:$0xff] }
  0x19   :  { %274 = vmatpush3.msra.mxu0 %v149_v14  ;;  %322 = vmatpush3.msra.mxu1 %v150_v12  ;;  %v139_v34 = vld [vmem:[#allocation2 + $0x8] sm:$0xff]  ;;  %v138_v36 = vld [vmem:[#allocation2] sm:$0xff] }
  0x1a   :  { %275 = vmatprep.subr.mxu0 %v164_v15  ;;  %307 = vmatprep.subr.mxu1 %v165_v13  ;;  %v38_v40 = vld [vmem:[%s426_s2] sm:$0x3] }
  0x1b   :  { %276 = vmatpush3.msra.mxu0 %v148_v16  ;;  %323 = vmatpush3.msra.mxu1 %v149_v14  ;;  %v43_v42 = vrot.slane %v38_v40, %v42_v39  ;;  %v47_v43 = vrot.slane %v38_v40, %v46_v41  ;;  %v264_v58 = vld [vmem:[%s428_s4] ss:$0 sm:$0xff] }
  0x1c   :  { %277 = vmatprep.subr.mxu0 %v163_v17  ;;  %308 = vmatprep.subr.mxu1 %v164_v15 }
  0x1d   :  { %278 = vmatpush3.msra.mxu0 %v147_v18  ;;  %324 = vmatpush3.msra.mxu1 %v148_v16 }
  0x1e   :  { %279 = vmatprep.subr.mxu0 %v162_v19  ;;  %309 = vmatprep.subr.mxu1 %v163_v17 }
  0x1f   :  { %280 = vmatpush3.msra.mxu0 %v146_v20  ;;  %325 = vmatpush3.msra.mxu1 %v147_v18 }
  0x20   :  { %281 = vmatprep.subr.mxu0 %v161_v21  ;;  %310 = vmatprep.subr.mxu1 %v162_v19 }
  0x21   :  { %282 = vmatpush3.msra.mxu0 %v145_v22  ;;  %326 = vmatpush3.msra.mxu1 %v146_v20 }
  0x22   :  { %283 = vmatprep.subr.mxu0 %v160_v23  ;;  %311 = vmatprep.subr.mxu1 %v161_v21 }
  0x23   :  { %284 = vmatpush3.msra.mxu0 %v144_v24  ;;  %327 = vmatpush3.msra.mxu1 %v145_v22 }
  0x24   :  { %285 = vmatprep.subr.mxu0 %v159_v25  ;;  %312 = vmatprep.subr.mxu1 %v160_v23 }
  0x25   :  { %286 = vmatpush3.msra.mxu0 %v143_v26  ;;  %328 = vmatpush3.msra.mxu1 %v144_v24 }
  0x26   :  { %287 = vmatprep.subr.mxu0 %v158_v27  ;;  %313 = vmatprep.subr.mxu1 %v159_v25 }
  0x27   :  { %288 = vmatpush3.msra.mxu0 %v142_v28  ;;  %329 = vmatpush3.msra.mxu1 %v143_v26 }
  0x28   :  { %314 = vmatprep.subr.mxu1 %v158_v27  ;;  %289 = vmatprep.subr.mxu0 %v157_v29 }
  0x29   :  { %330 = vmatpush3.msra.mxu1 %v142_v28  ;;  %290 = vmatpush3.msra.mxu0 %v141_v30 }
  0x2a   :  { %315 = vmatprep.subr.mxu1 %v157_v29  ;;  %291 = vmatprep.subr.mxu0 %v156_v31 }
  0x2b   :  { %331 = vmatpush3.msra.mxu1 %v141_v30  ;;  %292 = vmatpush3.msra.mxu0 %v140_v32 }
  0x2c   :  { %316 = vmatprep.subr.mxu1 %v156_v31  ;;  %293 = vmatprep.subr.mxu0 %v155_v33 }
  0x2d   :  { %332 = vmatpush3.msra.mxu1 %v140_v32  ;;  %294 = vmatpush3.msra.mxu0 %v139_v34 }
  0x2e   :  { %317 = vmatprep.subr.mxu1 %v155_v33  ;;  %295 = vmatprep.subr.mxu0 %v154_v35 }
  0x2f   :  { %333 = vmatpush3.msra.mxu1 %v139_v34  ;;  %296 = vmatpush3.msra.mxu0 %v138_v36 }
  0x30   :  { %318 = vmatprep.subr.mxu1 %v154_v35 }
  0x31   :  { %334 = vmatpush3.msra.mxu1 %v138_v36 }
  0xd0   :  { %v123_v44 = vpop.f32.mrf.mxu0 }
  0xd1   :  { %v124_v45 = vadd.f32 %v123_v44, %v43_v42 }
  0xd2   :  { %v125_v46 = vpop.f32.mrf.mxu0 }
  0xd3   :  { %v126_v47 = vadd.f32 %v125_v46, %v47_v43  ;;  %v134_v50 = vmax.f32 %v124_v45, 0.0 }
  0xd4   :  { %v129_v48 = vpop.f32.mrf.mxu0 }
  0xd5   :  { %v135_v49 = vmax.f32 %v126_v47, 0.0  ;;  %v130_v51 = vadd.f32 %v129_v48, %v43_v42 }
  0xd6   :  { %v131_v52 = vpop.f32.mrf.mxu0 }
  0xd7   :  { %234 = vmatprep.mubr.f32.mxu0 %v135_v49  ;;  %v132_v53 = vadd.f32 %v131_v52, %v47_v43  ;;  %v136_v55 = vmax.f32 %v130_v51, 0.0 }
  0xd8   :  { %235 = vmatmul.mubr.f32.vlgmr.msra.gmra.mxu0 %v134_v50 }
  0xd9   :  { %v137_v54 = vmax.f32 %v132_v53, 0.0 }
  0xdb   :  { %239 = vmatprep.mubr.f32.mxu1 %v137_v54 }
  0xdc   :  { %240 = vmatmul.mubr.f32.vlgmr.msra.gmra.mxu1 %v136_v55 }
 0x198   :  { %v297_v56 = vpop.f32.mrf.mxu0 }
 0x19a   :  { %v298_v57 = vpop.f32.mrf.mxu0 }
 0x19b   :  { %v299_v59 = vadd.f32 %v298_v57, %v297_v56 }
 0x19c   :  { %v300_v60 = vpop.f32.mrf.mxu1 }
 0x19d   :  { %v252_v61 = vadd.f32 %v299_v59, %v264_v58 }
 0x19e   :  { %v301_v62 = vpop.f32.mrf.mxu1 }
 0x19f   :  { %255 = vst.msk [vmem:[%s429_s5] sm:$0xff] %vm254_vm1, %v252_v61  ;;  %v302_v63 = vadd.f32 %v301_v62, %v300_v60 }
 0x1a1   :  { %v253_v0 = vadd.f32 %v302_v63, %v264_v58 }
 0x1a3   :  { %256 = vst.msk [vmem:[%s429_s5 + $0x8] sm:$0xff] %vm254_vm1, %v253_v0 }
 0x1a4   :  { %261 = vsyncpa [#allocation3], 1 }

</bundles_post_ra>
